<compile_context>
chip_gen: v5e
topology: v5e:2x2
jax: 0.10.0
libtpu: 0.0.40
codegen_flags: <defaults>
</compile_context>

<pallas_src>
import functools

import jax
import jax.numpy as jnp
from jax.experimental import pallas as pl
from jax.experimental.pallas import tpu as pltpu


def _tcn_kernel(x_ref, w_ref, b_ref, o_ref, carry_ref, *, dilation, pad):
    """One (batch, L-tile) grid step of dilated conv1d + bias + ReLU.

    x_ref:     (1, C_in, T)        current input tile (length on lanes)
    w_ref:     (C_out, K*C_in)     folded taps: w[co, k*C_in + ci] = weight[co, ci, k]
    b_ref:     (C_out, 1)          bias
    o_ref:     (1, C_out, T)       output tile (lane-dense)
    carry_ref: (C_in, max(pad,1))  last `pad` input columns of the previous tile
    """
    C_in = x_ref.shape[1]
    T = x_ref.shape[2]
    K = w_ref.shape[1] // C_in
    j = pl.program_id(1)

    if pad > 0:
        # First tile of every batch element: the carry IS the conv's left zero padding.
        @pl.when(j == 0)
        def _():
            carry_ref[...] = jnp.zeros_like(carry_ref)

    x_tile = x_ref[0, :, :]                                            # (C_in, T)

    if pad > 0:
        window = jnp.concatenate([carry_ref[...], x_tile], axis=1)     # (C_in, pad + T)
    else:
        window = x_tile

    # Fold the K dilated taps into a single contraction of depth K*C_in.
    if K > 1:
        xs = jnp.concatenate(
            [window[:, k * dilation:k * dilation + T] for k in range(K)], axis=0)
    else:
        xs = window[:, :T]                                             # (K*C_in, T)

    acc = jax.lax.dot_general(
        w_ref[...], xs,
        dimension_numbers=(((1,), (0,)), ((), ())),
        preferred_element_type=jnp.float32)                            # (C_out, T)
    acc = acc + b_ref[...]                                             # lane broadcast
    o_ref[0, :, :] = jnp.maximum(acc, 0.0).astype(o_ref.dtype)

    if pad > 0:
        # History for the next tile of this batch element.
        carry_ref[...] = x_tile[:, T - pad:]


def tcn_block_forward(x, weight, bias, *, dilation=1, l_tile=512):
    """x: (B, C_in, L) f32, weight: (C_out, C_in, K), bias: (C_out,) — PyTorch layout."""
    B, C_in, L = x.shape
    C_out, _, K = weight.shape
    assert K >= 1 and dilation >= 1
    pad = (K - 1) * dilation
    L_out = L + 2 * pad - dilation * (K - 1)                           # = L + pad

    # Lane-dense tile along L: a multiple of 128, no larger than needed, larger than `pad`.
    tile = ((max(128, int(l_tile)) + 127) // 128) * 128
    tile = min(tile, ((L_out + 127) // 128) * 128)
    while tile <= pad:
        tile += 128
    num_tiles = (L_out + tile - 1) // tile
    Lp = num_tiles * tile

    # Right-side zero pad only (also supplies the conv's RIGHT zero padding); the LEFT
    # padding is produced in-kernel by the zeroed carry.  No layout transposes.
    x_p = jnp.pad(x, ((0, 0), (0, 0), (0, Lp - L)))                    # (B, C_in, Lp)

    # Fold taps: w2d[co, k*C_in + ci] = weight[co, ci, k].
    w2d = jnp.transpose(weight, (0, 2, 1)).reshape(C_out, K * C_in)
    b2d = bias.reshape(C_out, 1)

    kernel = functools.partial(_tcn_kernel, dilation=dilation, pad=pad)

    y_p = pl.pallas_call(
        kernel,
        out_shape=jax.ShapeDtypeStruct((B, C_out, Lp), jnp.float32),
        grid=(B, num_tiles),
        in_specs=[
            pl.BlockSpec((1, C_in, tile), lambda b, j: (b, 0, j)),
            pl.BlockSpec((C_out, K * C_in), lambda b, j: (0, 0)),
            pl.BlockSpec((C_out, 1), lambda b, j: (0, 0)),
        ],
        out_specs=pl.BlockSpec((1, C_out, tile), lambda b, j: (b, 0, j)),
        scratch_shapes=[pltpu.VMEM((C_in, max(pad, 1)), jnp.float32)],
        compiler_params=pltpu.CompilerParams(
            # Batch tiles are independent (v7x megacore sharding); the L axis carries the
            # halo scratch sequentially, so it must stay "arbitrary".
            dimension_semantics=("parallel", "arbitrary")),
    )(x_p, w2d, b2d)

    return y_p[:, :, :L_out]


def _reference_forward(x_ncl, weight, bias, *, dilation=1):
    """Pure-JAX reference mirroring nn.Conv1d(..., padding=(K-1)*d) + ReLU."""
    K = weight.shape[-1]
    pad = (K - 1) * dilation
    y = jax.lax.conv_general_dilated(
        x_ncl, weight,
        window_strides=(1,),
        padding=[(pad, pad)],
        rhs_dilation=(dilation,),
        dimension_numbers=("NCH", "OIH", "NCH"),
    )
    y = y + bias[None, :, None]
    return jnp.maximum(y, 0.0)


if __name__ == "__main__":
    # Small shapes consistent with the module.
    B, C_in, C_out, L = 2, 4, 8, 16
    K, dilation = 3, 2

    key = jax.random.PRNGKey(0)
    kx, kw, kb = jax.random.split(key, 3)

    x = jax.random.normal(kx, (B, C_in, L), dtype=jnp.float32)
    fan_in = C_in * K
    bound = 1.0 / (fan_in ** 0.5)
    weight = jax.random.uniform(kw, (C_out, C_in, K), jnp.float32, -bound, bound)
    bias = jax.random.uniform(kb, (C_out,), jnp.float32, -bound, bound)

    fwd = jax.jit(functools.partial(tcn_block_forward, dilation=dilation))
    y = jax.block_until_ready(fwd(x, weight, bias))

    y_ref = _reference_forward(x, weight, bias, dilation=dilation)
    assert y.shape == (B, C_out, L + (K - 1) * dilation), y.shape
    max_err = float(jnp.max(jnp.abs(y - y_ref)))
    assert max_err < 1e-4, max_err

    print("KERNEL_OK")
</pallas_src>

<mosaic_0001>
module attributes {stable_mosaic.version = 11 : i64} {
  func.func @_tcn_kernel(%arg0: i32, %arg1: i32, %arg2: memref<1x4x128xf32, #tpu.memory_space<vmem>>, %arg3: memref<8x12xf32, #tpu.memory_space<vmem>>, %arg4: memref<8x1xf32, #tpu.memory_space<vmem>>, %arg5: memref<1x8x128xf32, #tpu.memory_space<vmem>>, %arg6: memref<4x4xf32, #tpu.memory_space<vmem>>) attributes {dimension_semantics = [#tpu.dimension_semantics<parallel>, #tpu.dimension_semantics<arbitrary>], iteration_bounds = array<i64: 2, 1>, scalar_prefetch = 0 : i64, scratch_operands = 1 : i64, tpu.core_type = #tpu.core_type<tc>, window_params = [{transform_indices = @transform_0, window_bounds = array<i64: 1, 4, 128>}, {pipeline_mode = #tpu.pipeline_mode<synchronous>, transform_indices = @transform_1, window_bounds = array<i64: 8, 12>}, {pipeline_mode = #tpu.pipeline_mode<synchronous>, transform_indices = @transform_2, window_bounds = array<i64: 8, 1>}, {transform_indices = @transform_3, window_bounds = array<i64: 1, 8, 128>}]} {
    %c0_i32 = arith.constant 0 : i32
    %0 = arith.cmpi eq, %arg1, %c0_i32 : i32
    %1 = arith.extui %0 : i1 to i32
    %c0_i32_0 = arith.constant 0 : i32
    %2 = arith.cmpi ne, %1, %c0_i32_0 : i32
    scf.if %2 {
      %cst_15 = arith.constant 0.000000e+00 : f32
      %23 = vector.broadcast %cst_15 : f32 to vector<4x4xf32>
      %c0_16 = arith.constant 0 : index
      %c0_17 = arith.constant 0 : index
      %24 = vector.load %arg6[%c0_16, %c0_17] : memref<4x4xf32, #tpu.memory_space<vmem>>, vector<4x4xf32>
      tpu.vector_store %arg6[%c0_16, %c0_17], %23 {strides = array<i32>} : memref<4x4xf32, #tpu.memory_space<vmem>>, vector<4x4xf32>,
    } else {
    }
    %c0 = arith.constant 0 : index
    %c0_1 = arith.constant 0 : index
    %c0_2 = arith.constant 0 : index
    %3 = vector.load %arg2[%c0, %c0_1, %c0_2] : memref<1x4x128xf32, #tpu.memory_space<vmem>>, vector<1x4x128xf32>
    %4 = vector.shape_cast %3 : vector<1x4x128xf32> to vector<4x128xf32>
    %c0_3 = arith.constant 0 : index
    %c0_4 = arith.constant 0 : index
    %5 = vector.load %arg6[%c0_3, %c0_4] : memref<4x4xf32, #tpu.memory_space<vmem>>, vector<4x4xf32>
    %6 = tpu.concatenate %5, %4 in 1 : vector<4x4xf32>, vector<4x128xf32> -> vector<4x132xf32>
    %7 = vector.extract_strided_slice %6 {offsets = [0, 0], sizes = [4, 128], strides = [1, 1]} : vector<4x132xf32> to vector<4x128xf32>
    %8 = vector.extract_strided_slice %6 {offsets = [0, 2], sizes = [4, 128], strides = [1, 1]} : vector<4x132xf32> to vector<4x128xf32>
    %9 = vector.extract_strided_slice %6 {offsets = [0, 4], sizes = [4, 128], strides = [1, 1]} : vector<4x132xf32> to vector<4x128xf32>
    %10 = tpu.concatenate %7, %8, %9 in 0 : vector<4x128xf32>, vector<4x128xf32>, vector<4x128xf32> -> vector<12x128xf32>
    %c0_5 = arith.constant 0 : index
    %c0_6 = arith.constant 0 : index
    %11 = vector.load %arg3[%c0_5, %c0_6] : memref<8x12xf32, #tpu.memory_space<vmem>>, vector<8x12xf32>
    %cst = arith.constant dense<0.000000e+00> : vector<8x128xf32>
    %12 = tpu.matmul %11, %10, %cst {dimension_numbers = #tpu.dot_dimension_numbers<[1], [0], [0], [1], [0, 0, 1, 1], [], []>} : vector<8x12xf32>, vector<12x128xf32>, vector<8x128xf32> -> vector<8x128xf32>
    %c0_7 = arith.constant 0 : index
    %c0_8 = arith.constant 0 : index
    %13 = vector.load %arg4[%c0_7, %c0_8] : memref<8x1xf32, #tpu.memory_space<vmem>>, vector<8x1xf32>
    %14 = vector.broadcast %13 : vector<8x1xf32> to vector<8x128xf32>
    %15 = arith.addf %12, %14 : vector<8x128xf32>
    %cst_9 = arith.constant 0.000000e+00 : f32
    %16 = vector.broadcast %cst_9 : f32 to vector<8x128xf32>
    %17 = arith.maximumf %15, %16 : vector<8x128xf32>
    %c0_10 = arith.constant 0 : index
    %c0_11 = arith.constant 0 : index
    %c0_12 = arith.constant 0 : index
    %18 = vector.load %arg5[%c0_10, %c0_11, %c0_12] : memref<1x8x128xf32, #tpu.memory_space<vmem>>, vector<1x8x128xf32>
    %19 = vector.shape_cast %18 : vector<1x8x128xf32> to vector<8x128xf32>
    %20 = vector.shape_cast %17 : vector<8x128xf32> to vector<1x8x128xf32>
    tpu.vector_store %arg5[%c0_10, %c0_11, %c0_12], %20 {strides = array<i32>} : memref<1x8x128xf32, #tpu.memory_space<vmem>>, vector<1x8x128xf32>,
    %21 = vector.extract_strided_slice %4 {offsets = [0, 124], sizes = [4, 4], strides = [1, 1]} : vector<4x128xf32> to vector<4x4xf32>
    %c0_13 = arith.constant 0 : index
    %c0_14 = arith.constant 0 : index
    %22 = vector.load %arg6[%c0_13, %c0_14] : memref<4x4xf32, #tpu.memory_space<vmem>>, vector<4x4xf32>
    tpu.vector_store %arg6[%c0_13, %c0_14], %21 {strides = array<i32>} : memref<4x4xf32, #tpu.memory_space<vmem>>, vector<4x4xf32>,
    return
  }
  func.func @transform_0(%arg0: i32, %arg1: i32) -> (i32, i32, i32) {
    %c0_i32 = arith.constant 0 : i32
    %c0_i32_0 = arith.constant 0 : i32
    return %arg0, %c0_i32, %arg1 : i32, i32, i32
  }
  func.func @transform_1(%arg0: i32, %arg1: i32) -> (i32, i32) {
    %c0_i32 = arith.constant 0 : i32
    %c0_i32_0 = arith.constant 0 : i32
    %c0_i32_1 = arith.constant 0 : i32
    return %c0_i32, %c0_i32_0 : i32, i32
  }
  func.func @transform_2(%arg0: i32, %arg1: i32) -> (i32, i32) {
    %c0_i32 = arith.constant 0 : i32
    %c0_i32_0 = arith.constant 0 : i32
    %c0_i32_1 = arith.constant 0 : i32
    return %c0_i32, %c0_i32_0 : i32, i32
  }
  func.func @transform_3(%arg0: i32, %arg1: i32) -> (i32, i32, i32) {
    %c0_i32 = arith.constant 0 : i32
    %c0_i32_0 = arith.constant 0 : i32
    return %arg0, %c0_i32, %arg1 : i32, i32, i32
  }
}

</mosaic_0001>

<bundles_post_ra>
// kernel: tcn_block_forward.1
= control target key start
LH: loop header
LB: loop body
LE: loop exit
PB: predicated region body
PF: predicated region fallthrough
CT: control target
= control target key end

     0   :  { %8 = vsyncpa [#allocation4], 0  ;;  %s636_s0 = inlined_call_operand.vmem [shape: f32[2,4,128], index: 0, kind: input, shape index: {}]   ;;  %s637_s1 = inlined_call_operand.vmem [shape: f32[8,12], index: 1, kind: input, shape index: {}]   ;;  %s638_s2 = inlined_call_operand.vmem [shape: f32[8,1], index: 2, kind: input, shape index: {}]   ;;  %s639_s3 = inlined_call_operand.hbm [shape: f32[2,8,128], index: 3, kind: output, shape index: {}]  }
   0x1   :  { %10 = vsyncpa [#allocation4 + $0x1], 0  ;;  %s533_s12 = smov 0   ;;  %s535_s13 = smov 0  }
   0x2   :  { %s537_s14 = smov 0   ;;  %s539_s15 = smov 0  }
   0x3   :  { %s541_s16 = smov 0   ;;  %s543_s17 = smov 0  }
   0x4 LB: > { %s348_s18 = sadd.s32 4294967295, %s506_s17   ;;  %s349_s19 = sadd.s32 4294967294, %s506_s17   ;;  %s506_s17 = sphi %s543_s17, %s16_s17   ;;  %s502_s16 = sphi %s541_s16, %s646_s16   ;;  %s498_s15 = sphi %s539_s15, %s645_s15   ;;  %s494_s14 = sphi %s537_s14, %s644_s14   ;;  %s490_s13 = sphi %s535_s13, %s643_s13   ;;  %s486_s12 = sphi %s533_s12, %s642_s12  }
   0x5   : > { %s28_s20 = sadd.s32 1, %s502_s16  ;;  %s107_s21 = sadd.s32 1, %s494_s14 }
   0x6   : > { %p30_p0 = scmp.ge.s32.totalorder %s28_s20, 2  ;;  %p117_p1 = scmp.ne.s32.totalorder %s494_s14, %s490_s13 }
   0x7   : > { %p118_p2 = scmp.eq.s32.totalorder %s348_s18, 1  ;;  %p123_p3 = scmp.ne.s32.totalorder %s490_s13, %s486_s12 }
   0x8   : > { %s648_s20 = smov (%p30_p0, %s28_s20), 0  ;;  %p124_p5 = scmp.eq.s32.totalorder %s349_s19, 1 }
   0x9   : > { %p573_p4 = por %p118_p2, %p117_p1  ;;  %s102_s23 = ssub.s32 %s502_s16, %s648_s20 }
   0xa   : > { %p352_p6 = scmp.ge.s32.totalorder %s506_s17, 1  ;;  %p105_p7 = scmp.eq.s32.totalorder %s102_s23, 0 }
   0xb   : > { %p580_p8 = por %p124_p5, %p123_p3  ;;  %p158_p9 = scmp.lt.s32.totalorder %s506_s17, 3 }
   0xc   : > { %s586_s25 = scalar_select %p105_p7, %s494_s14, %s107_s21  }
   0xd   : > { %p159_p10 = pnand %p352_p6, %p158_p9 }
   0xe   : > { %p184_p11 = scmp.lt.s32.totalorder (!%p159_p10), %s498_s15, 1  ;;  %s508_s4 = smov (!%p159_p10), 4  }
   0xf   : > { %162 = sbr.rel (%p159_p10) target bundleno = 401 (0x191), region = 32  ;;  %s510_s5 = smov (!%p159_p10), 124  }
  0x10   : > { %s511_s6 = smov (!%p159_p10), 126   ;;  %s181_s11 = sand.u32 (!%p159_p10), 1, %s490_s13  }
  0x11   : > { %s353_s18 = sshll.u32 (!%p159_p10), %s181_s11, 3  ;;  %s358_s19 = sshll.u32 (!%p159_p10), %s498_s15, 3 }
  0x12   : > { %s448_s7 = scalar_lea.hbm (!%p159_p10), %s639_s3, 16 }
  0x14   : > { %s185_s26 = scalar_select %p184_p11, %s498_s15, 1  ;;  %vm195_vm0 = vcmask 27648   ;;  %v509_v1 = vmov 0.0   ;;  %vm203_vm1 = vcmask 31744   ;;  %v224_v8 = vld [vmem:[%s638_s2] sm:$0xff]  ;;  %v512_v9 = vmov 0  }
  0x15   : > { %196 = vst.msk [vmem:[#allocation2] sm:$0xf] %vm195_vm0, %v509_v1  ;;  %426 = vset.pattern.permute.xlu2 %v512_v9  ;;  %427 = vset.pattern.permute.xlu0 %v512_v9  ;;  %vm219_vm2 = vcmask 1014784   ;;  %vm221_vm3 = vcmask 1043456   ;;  %vm212_vm4 = vcmask 1031168   ;;  %v223_v17 = vld [vmem:[%s637_s1] sm:$0xff] }
  0x16   : > { %s354_s27 = sshll.u32 %s185_s26, 2  ;;  %227 = vperm.xlu2 %426, %v224_v8   ;;  %vm230_vm5 = vcmask 97280   ;;  %s272_s26 = scalar_lea.hbm %s639_s3, %s358_s19 }
  0x17   : > { %s190_s30 = scalar_lea.vmem %s636_s0, %s354_s27  ;;  %s183_s27 = scalar_lea.vmem [#allocation3], %s353_s18 }
  0x18   : > { %v197_v0 = vld [vmem:[%s190_s30] sm:$0xf]  ;;  %s274_s28 = sshll.u32 %s183_s27, 4  ;;  %s276_s29 = sshll.u32 %s272_s26, 4  ;;  %s275_s28 = int_to_ptr.vmem [resolvable:$true] %s274_s28  ;;  %s277_s29 = int_to_ptr.hbm [resolvable:$true] %s276_s29 }
  0x19   : > { %200 = vrot.lane.b32.xlu0 %v197_v0, %s508_s4  ;;  %s261_s30 = scalar_lea.sflag [#allocation4], %s181_s11  ;;  %s442_s4 = sshra.s32 %s277_s29, 4  ;;  %s443_s4 = int_to_ptr.hbm [resolvable:$true] %s442_s4 }
  0x1a   : > { %p449_p1 = scmp.lt.s32.totalorder %s443_s4, %s639_s3 }
  0x1c   : > { %v198_v2 = vld [vmem:[#allocation2] sm:$0xf] }
  0x70   : > { %v228_v19 = vpop.permute.xlu2 %227 }
  0x8b   : > { %v201_v3 = vpop.permute.xlu0 %200 }
  0x8c   : > { %217 = vrot.lane.b32.xlu1 %v201_v3, %s510_s5  ;;  %v204_v4 = vsel %vm203_vm1, %v198_v2, %v201_v3  ;;  %259 = vst.msk [vmem:[#allocation2] sm:$0xf] %vm195_vm0, %v201_v3  ;;  %v207_v5 = vrot.slane %v201_v3, 4 }
  0x8d   : > { %215 = vrot.lane.b32.xlu0 %v204_v4, %s510_s5  ;;  %v206_v6 = vrot.slane %v204_v4, 4  ;;  %s444_s5 = scalar_lea.hbm %s443_s4, 8 }
  0x8e   : > { %p445_p12 = scmp.ne.s32.totalorder %s443_s4, %s444_s5  ;;  %p450_p2 = scmp.lt.s32.totalorder %s448_s7, %s444_s5 }
  0x8f   : > { %v421_v7 = vpack.i.bf16 %v207_v5, %v206_v6 }
  0x90   : > { %p446_p13 = pnand %p445_p12, %p573_p4  ;;  %p451_p3 = por %p450_p2, %p449_p1 }
  0x92   : > { %p447_p0 = pneg %p446_p13 }
  0x94   : > { %422 = vrot.lane.b32.xlu1 %v421_v7, %s511_s6  ;;  %p452_p5 = pnand %p451_p3, %p447_p0 }
  0xfe   : > { %v218_v10 = vpop.permute.xlu1 %217 }
  0xff   : > { %v216_v11 = vpop.permute.xlu0 %215 }
 0x100   : > { %v220_v12 = vsel %vm219_vm2, %v216_v11, %v218_v10 }
 0x101   : > { %355 = vmatpush.msk.msra.mxu0 %vm221_vm3, %v220_v12 }
 0x106   : > { %v423_v13 = vpop.permute.xlu1 %422 }
 0x107   : > { %v425_v14 = vunpack.i.h.bf16 %v423_v13  ;;  %v424_v15 = vunpack.i.l.bf16 %v423_v13 }
 0x109   : > { %v213_v16 = vsel %vm212_vm4, %v424_v15, %v425_v14 }
 0x10a   : > { %v222_v18 = vsel %vm221_vm3, %v204_v4, %v213_v16 }
 0x10b   : > { %251 = vmatpush.msra.mxu0 %v222_v18 }
 0x10c   : > { %356 = vmatmul.msk.f32.vlgmr.msra.gmra.mxu0 %vm230_vm5, %v223_v17 }
 0x189   : > { %v253_v20 = vpop.f32.mrf.mxu0 }
 0x18a   : > { %v254_v21 = vadd.f32 %v253_v20, %v228_v19 }
 0x18c   : > { %v256_v22 = vmax.f32 %v254_v21, 0.0 }
 0x18e   : > { %257 = vst [vmem:[%s183_s27] sm:$0xff] %v256_v22 }
 0x18f   : > { %455 = shalt.err (!%p452_p5)
}
 0x190   : > { %361 = dma.vmem_to_hbm [thread:$0]  (%p573_p4), %s275_s28, 128, %s277_s29, %s261_s30  }
 0x191 PF: > { %p367_p6 = scmp.ge.s32.totalorder %s506_s17, 2  ;;  %s288_s10 = sand.u32 1, %s486_s12  }
 0x192   : > { %s289_s11 = scalar_lea.sflag [#allocation4], %s288_s10 }
 0x193   : > { %p364_p7 = pnand %p367_p6, %p580_p8 }
 0x195   : > { %p365_p9 = pneg %p364_p7 }
 0x197   : > { %481 = dma.done.wait (%p365_p9), %s289_s11, 128  }
 0x198   : > { %483 = vsyncadd (%p365_p9), %s289_s11, 4294967168  ;;  %s16_s17 = sadd.s32 1, %s506_s17   ;;  %s642_s12 = smov %s490_s13 }
 0x199   : > { %p13_p10 = scmp.ge.s32.totalorder %s16_s17, 4   ;;  %s643_s13 = smov %s494_s14 }
 0x19a   : > { %s644_s14 = smov %s586_s25  ;;  %s645_s15 = smov %s502_s16 }
 0x19b   : > { %s646_s16 = smov %s648_s20  ;;  %15 = sbr.rel (!%p13_p10) target bundleno = 4 (0x4), region = 71 }
 0x1a0   :  { %295 = vsyncpa [#allocation4], 1 }
 0x1a1   :  { %297 = vsyncpa [#allocation4 + $0x1], 1 }

</bundles_post_ra>
